<compile_context>
chip_gen: v5e
topology: v5e:2x2
jax: 0.10.0
libtpu: 0.0.40
codegen_flags: <defaults>
</compile_context>

<pallas_src>
import jax
import jax.numpy as jnp
from jax.experimental import pallas as pl
from jax.experimental.pallas import tpu as pltpu

HIDDEN = 128


def _round_up(v, m):
    return ((v + m - 1) // m) * m


def _ensemble_fused_kernel(x_ref, w1_ref, b1_ref, w2_ref, b2_ref, o_ref):
    # x_ref : (TB, Dp)    bf16 batch tile (D zero-padded to a 128 multiple)
    # w1_ref: (Dp, M*H)   bf16 layer-1 weights, all models folded onto lanes
    # b1_ref: (1,  M*H)   f32 layer-1 biases (folded)
    # w2_ref: (M*H, Op)   f32 block-diagonal layer-2 weights (lane-padded)
    # b2_ref: (1,  Op)    f32 layer-2 biases (lane-padded)
    # o_ref : (TB, Op)    f32 lane-dense output tile
    h = jnp.dot(x_ref[...], w1_ref[...], preferred_element_type=jnp.float32)
    h = jnp.maximum(h + b1_ref[...], 0.0)
    y = jnp.dot(h, w2_ref[...], preferred_element_type=jnp.float32)
    o_ref[...] = y + b2_ref[...]


def ensemble_forward(x, w1, b1, w2, b2):
    """x: (B, D); w1: (M, H, D); b1: (M, H); w2: (M, O, H); b2: (M, O).

    Returns (M, B) if O == 1 else (M, B, O).
    """
    B, D = x.shape
    M, H, _ = w1.shape
    O = w2.shape[1]
    MH = M * H                        # always a multiple of 128 (H == 128)
    Dp = _round_up(D, 128)            # lane-aligned contraction dim
    Op = _round_up(M * O, 128)        # lane-dense output width

    if B <= 256:
        TB = _round_up(max(B, 1), 8)
        Bp = TB
    else:
        TB = 256
        Bp = _round_up(B, TB)

    # ---- wrapper-side weight re-layout (cheap XLA ops, done per call) -------
    # Layer 1: (M, H, D) -> (D, M*H); column block m holds model m's W1.T.
    w1f = jnp.transpose(w1, (2, 0, 1)).reshape(D, MH)
    w1f = jnp.pad(w1f, ((0, Dp - D), (0, 0))).astype(jnp.bfloat16)
    b1f = b1.reshape(1, MH).astype(jnp.float32)

    # Layer 2: block-diagonal (M*H, M*O) so all models share one matmul; tiny
    # at these sizes (scales as M^2*H*O, fine for modest M), lane-padded to Op.
    w2t = jnp.transpose(w2, (0, 2, 1))                         # (M, H, O)
    w2bd = jnp.einsum("mho,mn->mhno", w2t, jnp.eye(M, dtype=w2.dtype))
    w2bd = w2bd.reshape(MH, M * O)
    w2bd = jnp.pad(w2bd, ((0, 0), (0, Op - M * O))).astype(jnp.float32)
    b2f = jnp.pad(b2.reshape(1, M * O), ((0, 0), (0, Op - M * O)))
    b2f = b2f.astype(jnp.float32)

    xq = jnp.pad(x, ((0, Bp - B), (0, Dp - D))).astype(jnp.bfloat16)

    out = pl.pallas_call(
        _ensemble_fused_kernel,
        out_shape=jax.ShapeDtypeStruct((Bp, Op), jnp.float32),
        grid_spec=pltpu.PrefetchScalarGridSpec(
            num_scalar_prefetch=0,
            grid=(Bp // TB,),
            in_specs=[
                pl.BlockSpec((TB, Dp), lambda b: (b, 0)),   # x batch tile
                pl.BlockSpec((Dp, MH), lambda b: (0, 0)),   # folded W1 (resident)
                pl.BlockSpec((1, MH), lambda b: (0, 0)),    # folded b1
                pl.BlockSpec((MH, Op), lambda b: (0, 0)),   # block-diag W2
                pl.BlockSpec((1, Op), lambda b: (0, 0)),    # padded b2
            ],
            out_specs=pl.BlockSpec((TB, Op), lambda b: (b, 0)),
        ),
        compiler_params=pltpu.CompilerParams(
            dimension_semantics=("parallel",),
        ),
    )(xq, w1f, b1f, w2bd, b2f)

    y = out[:B, : M * O].reshape(B, M, O)
    y = jnp.transpose(y, (1, 0, 2))                            # (M, B, O)
    if O == 1:
        y = y[..., 0]                                          # torch .squeeze(-1)
    return y


def init_ensemble_params(key, input_dim, output_dim, num_models):
    """Matches MLP._initialize_weights: weight ~ N(0, 0.1), bias = 0.1."""
    k1, k2 = jax.random.split(key)
    w1 = 0.1 * jax.random.normal(
        k1, (num_models, HIDDEN, input_dim), dtype=jnp.float32)
    b1 = jnp.full((num_models, HIDDEN), 0.1, dtype=jnp.float32)
    w2 = 0.1 * jax.random.normal(
        k2, (num_models, output_dim, HIDDEN), dtype=jnp.float32)
    b2 = jnp.full((num_models, output_dim), 0.1, dtype=jnp.float32)
    return w1, b1, w2, b2


def ensemble_reference(x, w1, b1, w2, b2):
    # Mirror the kernel's bf16 layer-1 streaming (same quantized values), with
    # all accumulation in f32 (precision=HIGHEST), for apples-to-apples checks.
    xq = x.astype(jnp.bfloat16).astype(jnp.float32)
    w1q = w1.astype(jnp.bfloat16).astype(jnp.float32)
    h = jnp.einsum("bd,mhd->mbh", xq, w1q,
                   precision=jax.lax.Precision.HIGHEST)
    h = jnp.maximum(h + b1[:, None, :], 0.0)
    y = jnp.einsum("mbh,moh->mbo", h, w2,
                   precision=jax.lax.Precision.HIGHEST)
    y = y + b2[:, None, :]
    if y.shape[-1] == 1:
        y = y[..., 0]
    return y


if __name__ == "__main__":
    key = jax.random.PRNGKey(0)
    kx, kp = jax.random.split(key)

    batch = 8
    input_dim = 32
    output_dim = 1
    num_models = 3

    x = jax.random.normal(kx, (batch, input_dim), dtype=jnp.float32)
    w1, b1, w2, b2 = init_ensemble_params(kp, input_dim, output_dim, num_models)

    out = ensemble_forward(x, w1, b1, w2, b2)
    out = jax.block_until_ready(out)

    ref = ensemble_reference(x, w1, b1, w2, b2)
    assert out.shape == (num_models, batch), out.shape
    assert jnp.allclose(out, ref, atol=1e-4, rtol=1e-4), "mismatch vs reference"

    print("KERNEL_OK")
</pallas_src>

<mosaic_0001>
module attributes {stable_mosaic.version = 11 : i64} {
  func.func @_ensemble_fused_kernel(%arg0: i32, %arg1: memref<8x128xbf16, #tpu.memory_space<vmem>>, %arg2: memref<128x384xbf16, #tpu.memory_space<vmem>>, %arg3: memref<1x384xf32, #tpu.memory_space<vmem>>, %arg4: memref<384x128xf32, #tpu.memory_space<vmem>>, %arg5: memref<1x128xf32, #tpu.memory_space<vmem>>, %arg6: memref<8x128xf32, #tpu.memory_space<vmem>>) attributes {dimension_semantics = [#tpu.dimension_semantics<parallel>], iteration_bounds = array<i64: 1>, scalar_prefetch = 0 : i64, scratch_operands = 0 : i64, tpu.core_type = #tpu.core_type<tc>, window_params = [{transform_indices = @transform_0, window_bounds = array<i64: 8, 128>}, {pipeline_mode = #tpu.pipeline_mode<synchronous>, transform_indices = @transform_1, window_bounds = array<i64: 128, 384>}, {pipeline_mode = #tpu.pipeline_mode<synchronous>, transform_indices = @transform_2, window_bounds = array<i64: 1, 384>}, {pipeline_mode = #tpu.pipeline_mode<synchronous>, transform_indices = @transform_3, window_bounds = array<i64: 384, 128>}, {pipeline_mode = #tpu.pipeline_mode<synchronous>, transform_indices = @transform_4, window_bounds = array<i64: 1, 128>}, {transform_indices = @transform_5, window_bounds = array<i64: 8, 128>}]} {
    %c0 = arith.constant 0 : index
    %c0_0 = arith.constant 0 : index
    %0 = vector.load %arg1[%c0, %c0_0] : memref<8x128xbf16, #tpu.memory_space<vmem>>, vector<8x128xbf16>
    %c0_1 = arith.constant 0 : index
    %c0_2 = arith.constant 0 : index
    %1 = vector.load %arg2[%c0_1, %c0_2] : memref<128x384xbf16, #tpu.memory_space<vmem>>, vector<128x384xbf16>
    %cst = arith.constant dense<0.000000e+00> : vector<8x384xf32>
    %2 = tpu.matmul %0, %1, %cst {dimension_numbers = #tpu.dot_dimension_numbers<[1], [0], [0], [1], [0, 0, 1, 1], [], []>} : vector<8x128xbf16>, vector<128x384xbf16>, vector<8x384xf32> -> vector<8x384xf32>
    %c0_3 = arith.constant 0 : index
    %c0_4 = arith.constant 0 : index
    %3 = vector.load %arg3[%c0_3, %c0_4] : memref<1x384xf32, #tpu.memory_space<vmem>>, vector<1x384xf32>
    %4 = vector.broadcast %3 : vector<1x384xf32> to vector<8x384xf32>
    %5 = arith.addf %2, %4 : vector<8x384xf32>
    %cst_5 = arith.constant 0.000000e+00 : f32
    %6 = vector.broadcast %cst_5 : f32 to vector<8x384xf32>
    %7 = arith.maximumf %5, %6 : vector<8x384xf32>
    %c0_6 = arith.constant 0 : index
    %c0_7 = arith.constant 0 : index
    %8 = vector.load %arg4[%c0_6, %c0_7] : memref<384x128xf32, #tpu.memory_space<vmem>>, vector<384x128xf32>
    %cst_8 = arith.constant dense<0.000000e+00> : vector<8x128xf32>
    %9 = tpu.matmul %7, %8, %cst_8 {dimension_numbers = #tpu.dot_dimension_numbers<[1], [0], [0], [1], [0, 0, 1, 1], [], []>} : vector<8x384xf32>, vector<384x128xf32>, vector<8x128xf32> -> vector<8x128xf32>
    %c0_9 = arith.constant 0 : index
    %c0_10 = arith.constant 0 : index
    %10 = vector.load %arg5[%c0_9, %c0_10] : memref<1x128xf32, #tpu.memory_space<vmem>>, vector<1x128xf32>
    %11 = vector.broadcast %10 : vector<1x128xf32> to vector<8x128xf32>
    %12 = arith.addf %9, %11 : vector<8x128xf32>
    %c0_11 = arith.constant 0 : index
    %c0_12 = arith.constant 0 : index
    %13 = vector.load %arg6[%c0_11, %c0_12] : memref<8x128xf32, #tpu.memory_space<vmem>>, vector<8x128xf32>
    tpu.vector_store %arg6[%c0_11, %c0_12], %12 {strides = array<i32>} : memref<8x128xf32, #tpu.memory_space<vmem>>, vector<8x128xf32>,
    return
  }
  func.func @transform_0(%arg0: i32) -> (i32, i32) {
    %c0_i32 = arith.constant 0 : i32
    %c0_i32_0 = arith.constant 0 : i32
    return %arg0, %c0_i32 : i32, i32
  }
  func.func @transform_1(%arg0: i32) -> (i32, i32) {
    %c0_i32 = arith.constant 0 : i32
    %c0_i32_0 = arith.constant 0 : i32
    %c0_i32_1 = arith.constant 0 : i32
    return %c0_i32, %c0_i32_0 : i32, i32
  }
  func.func @transform_2(%arg0: i32) -> (i32, i32) {
    %c0_i32 = arith.constant 0 : i32
    %c0_i32_0 = arith.constant 0 : i32
    %c0_i32_1 = arith.constant 0 : i32
    return %c0_i32, %c0_i32_0 : i32, i32
  }
  func.func @transform_3(%arg0: i32) -> (i32, i32) {
    %c0_i32 = arith.constant 0 : i32
    %c0_i32_0 = arith.constant 0 : i32
    %c0_i32_1 = arith.constant 0 : i32
    return %c0_i32, %c0_i32_0 : i32, i32
  }
  func.func @transform_4(%arg0: i32) -> (i32, i32) {
    %c0_i32 = arith.constant 0 : i32
    %c0_i32_0 = arith.constant 0 : i32
    %c0_i32_1 = arith.constant 0 : i32
    return %c0_i32, %c0_i32_0 : i32, i32
  }
  func.func @transform_5(%arg0: i32) -> (i32, i32) {
    %c0_i32 = arith.constant 0 : i32
    %c0_i32_0 = arith.constant 0 : i32
    return %arg0, %c0_i32 : i32, i32
  }
}

</mosaic_0001>

<bundles_post_ra>
// kernel: tpu_custom_call.1
= control target key start
LH: loop header
LB: loop body
LE: loop exit
PB: predicated region body
PF: predicated region fallthrough
CT: control target
= control target key end

     0   :  { %10 = vsyncpa [#allocation3], 0  ;;  %s738_s0 = inlined_call_operand.hbm [shape: bf16[8,128], index: 0, kind: input, shape index: {}]   ;;  %s739_s1 = inlined_call_operand.hbm [shape: bf16[128,384], index: 1, kind: input, shape index: {}]   ;;  %s740_s2 = inlined_call_operand.hbm [shape: f32[1,384], index: 2, kind: input, shape index: {}]   ;;  %s741_s3 = inlined_call_operand.hbm [shape: f32[384,128], index: 3, kind: input, shape index: {}]   ;;  %s742_s4 = inlined_call_operand.vmem [shape: f32[1,128], index: 4, kind: input, shape index: {}]   ;;  %s743_s5 = inlined_call_operand.hbm [shape: f32[8,128], index: 5, kind: output, shape index: {}]  }
   0x1   :  { %11 = vsyncpa [#allocation6], 0 }
   0x2   :  { %12 = vsyncpa [#allocation9], 0  ;;  %s29_s20 = sshll.u32 %s739_s1, 4  ;;  %s30_s20 = int_to_ptr.hbm [resolvable:$true] %s29_s20 }
   0x3   :  { %13 = vsyncpa [#allocation4], 0  ;;  %s681_s21 = smov [#allocation5]   ;;  %s19_s25 = sshll.u32 %s738_s0, 4  ;;  %s20_s25 = int_to_ptr.hbm [resolvable:$true] %s19_s25 }
   0x4   :  { %s31_s22 = sshll.u32 %s681_s21, 4  ;;  %s682_s26 = smov 192   ;;  %s32_s22 = int_to_ptr.vmem [resolvable:$true] %s31_s22 }
   0x5   :  { %s683_s27 = smov 12   ;;  %s684_s28 = smov [#allocation2]  }
   0x6   :  { %37 = dma.hbm_to_vmem [thread:$0]  %s30_s20, 3072, %s32_s22, [#allocation6], %s682_s26, %s682_s26, %s683_s27  }
   0x7   :  { %s21_s29 = sshll.u32 %s684_s28, 4  ;;  %s43_s7 = sshll.u32 %s740_s2, 4  ;;  %s22_s29 = int_to_ptr.vmem [resolvable:$true] %s21_s29  ;;  %s44_s7 = int_to_ptr.hbm [resolvable:$true] %s43_s7 }
   0x8   :  { %24 = dma.hbm_to_vmem [thread:$0]  %s20_s25, 64, %s22_s29, [#allocation3]  }
   0x9   :  { %s53_s9 = sshll.u32 %s741_s3, 4  ;;  %s685_s10 = smov [#allocation7]   ;;  %s54_s9 = int_to_ptr.hbm [resolvable:$true] %s53_s9 }
   0xa   :  { %s45_s11 = sshll.u32 %s685_s10, 4  ;;  %s686_s0 = smov [#allocation8]   ;;  %s46_s11 = int_to_ptr.vmem [resolvable:$true] %s45_s11 }
   0xb   :  { %48 = dma.hbm_to_vmem [thread:$0]  %s44_s7, 48, %s46_s11, [#allocation6]  }
   0xc   :  { %s55_s12 = sshll.u32 %s686_s0, 4  ;;  %s687_s13 = smov 128   ;;  %s56_s12 = int_to_ptr.vmem [resolvable:$true] %s55_s12 }
   0xd   :  { %s688_s14 = smov 8  }
   0xe   :  { %61 = dma.hbm_to_vmem [thread:$0]  %s54_s9, 6144, %s56_s12, [#allocation9], %s687_s13, %s687_s13, %s688_s14  }
   0xf   :  { %673 = dma.done.wait [#allocation3], 64  }
  0x10   :  { %674 = vsyncadd [#allocation3], 4294967232 }
  0x11   :  { %675 = dma.done.wait [#allocation6], 3120  }
  0x12   :  { %676 = vsyncadd [#allocation6], 4294964176 }
  0x13   :  { %677 = dma.done.wait [#allocation9], 6144  }
  0x14   :  { %678 = vsyncadd [#allocation9], 4294961152  ;;  %v509_v0 = vld [vmem:[#allocation5 + $0xa8] sm:$0xf]  ;;  %v541_v1 = vld [vmem:[#allocation5 + $0xb0] sm:$0xf0] }
  0x15   :  { %v540_v2 = vld [vmem:[#allocation5 + $0xac] sm:$0xf]  ;;  %v510_v3 = vor.u32 %v541_v1, %v509_v0  ;;  %v511_v4 = vld [vmem:[#allocation5 + $0xb4] sm:$0xf0]  ;;  %v517_v5 = vld [vmem:[#allocation5 + $0xb0] sm:$0xf] }
  0x16   :  { %v542_v6 = vld [vmem:[#allocation5 + $0xb8] sm:$0xf0]  ;;  %v514_v7 = vor.u32 %v540_v2, %v511_v4  ;;  %v497_v9 = vld [vmem:[#allocation5 + $0x90] sm:$0xf]  ;;  %v537_v11 = vld [vmem:[#allocation5 + $0x94] sm:$0xf] }
  0x17   :  { %v518_v8 = vor.u32 %v542_v6, %v517_v5  ;;  %v538_v10 = vld [vmem:[#allocation5 + $0x98] sm:$0xf0]  ;;  %249 = vmatpush.bf16.msra.mxu0 %v510_v3  ;;  %v499_v13 = vld [vmem:[#allocation5 + $0x9c] sm:$0xf0]  ;;  %v505_v14 = vld [vmem:[#allocation5 + $0x98] sm:$0xf] }
  0x18   :  { %v498_v12 = vor.u32 %v538_v10, %v497_v9  ;;  %v539_v15 = vld [vmem:[#allocation5 + $0xa0] sm:$0xf0]  ;;  %262 = vmatpush.bf16.msra.mxu1 %v514_v7  ;;  %v502_v16 = vor.u32 %v537_v11, %v499_v13  ;;  %v485_v18 = vld [vmem:[#allocation5 + $0x78] sm:$0xf]  ;;  %v534_v20 = vld [vmem:[#allocation5 + $0x7c] sm:$0xf] }
  0x19   :  { %275 = vmatpush.bf16.msra.mxu2 %v518_v8  ;;  %v506_v17 = vor.u32 %v539_v15, %v505_v14  ;;  %v535_v19 = vld [vmem:[#allocation5 + $0x80] sm:$0xf0]  ;;  %v487_v21 = vld [vmem:[#allocation5 + $0x84] sm:$0xf0]  ;;  %v493_v22 = vld [vmem:[#allocation5 + $0x80] sm:$0xf] }
  0x1a   :  { %v536_v23 = vld [vmem:[#allocation5 + $0x88] sm:$0xf0]  ;;  %v486_v24 = vor.u32 %v535_v19, %v485_v18  ;;  %v490_v25 = vor.u32 %v534_v20, %v487_v21  ;;  %v473_v27 = vld [vmem:[#allocation5 + $0x60] sm:$0xf]  ;;  %v531_v29 = vld [vmem:[#allocation5 + $0x64] sm:$0xf] }
  0x1b   :  { %250 = vmatpush.bf16.msra.mxu0 %v498_v12  ;;  %v494_v26 = vor.u32 %v536_v23, %v493_v22  ;;  %v532_v28 = vld [vmem:[#allocation5 + $0x68] sm:$0xf0]  ;;  %v475_v30 = vld [vmem:[#allocation5 + $0x6c] sm:$0xf0]  ;;  %v481_v31 = vld [vmem:[#allocation5 + $0x68] sm:$0xf] }
  0x1c   :  { %263 = vmatpush.bf16.msra.mxu1 %v502_v16  ;;  %v533_v32 = vld [vmem:[#allocation5 + $0x70] sm:$0xf0]  ;;  %v474_v33 = vor.u32 %v532_v28, %v473_v27  ;;  %v478_v34 = vor.u32 %v531_v29, %v475_v30  ;;  %v461_v36 = vld [vmem:[#allocation5 + $0x48] sm:$0xf]  ;;  %v528_v38 = vld [vmem:[#allocation5 + $0x4c] sm:$0xf] }
  0x1d   :  { %276 = vmatpush.bf16.msra.mxu2 %v506_v17  ;;  %v482_v35 = vor.u32 %v533_v32, %v481_v31  ;;  %v529_v37 = vld [vmem:[#allocation5 + $0x50] sm:$0xf0]  ;;  %v463_v39 = vld [vmem:[#allocation5 + $0x54] sm:$0xf0]  ;;  %v469_v40 = vld [vmem:[#allocation5 + $0x50] sm:$0xf] }
  0x1e   :  { %v530_v41 = vld [vmem:[#allocation5 + $0x58] sm:$0xf0]  ;;  %v462_v42 = vor.u32 %v529_v37, %v461_v36  ;;  %v449_v43 = vld [vmem:[#allocation5 + $0x30] sm:$0xf]  ;;  %v466_v45 = vor.u32 %v528_v38, %v463_v39  ;;  %v525_v47 = vld [vmem:[#allocation5 + $0x34] sm:$0xf] }
  0x1f   :  { %251 = vmatpush.bf16.msra.mxu0 %v486_v24  ;;  %v526_v44 = vld [vmem:[#allocation5 + $0x38] sm:$0xf0]  ;;  %v470_v46 = vor.u32 %v530_v41, %v469_v40  ;;  %v305_v49 = vld [vmem:[#allocation8 + $0x70] sm:$0xff]  ;;  %v451_v50 = vld [vmem:[#allocation5 + $0x3c] sm:$0xf0]  ;;  %s689_s15 = smov [#allocation10]  }
  0x20   :  { %264 = vmatpush.bf16.msra.mxu1 %v490_v25  ;;  %v306_v48 = vld [vmem:[#allocation8 + $0x78] sm:$0xff]  ;;  %v457_v51 = vld [vmem:[#allocation5 + $0x38] sm:$0xf]  ;;  %v527_v52 = vld [vmem:[#allocation5 + $0x40] sm:$0xf0]  ;;  %v450_v54 = vor.u32 %v526_v44, %v449_v43  ;;  %v454_v56 = vor.u32 %v525_v47, %v451_v50  ;;  %s409_s16 = sshll.u32 %s689_s15, 4  ;;  %s410_s16 = int_to_ptr.vmem [resolvable:$true] %s409_s16 }
  0x21   :  { %277 = vmatpush.bf16.msra.mxu2 %v494_v26  ;;  %343 = vmatpush.msra.mxu3 %v306_v48  ;;  %v304_v53 = vld [vmem:[#allocation8 + $0x68] sm:$0xff]  ;;  %v437_v55 = vld [vmem:[#allocation5 + $0x18] sm:$0xf]  ;;  %v458_v57 = vor.u32 %v527_v52, %v457_v51  ;;  %v523_v58 = vld [vmem:[#allocation5 + $0x20] sm:$0xf0]  ;;  %s411_s19 = sshll.u32 %s743_s5, 4  ;;  %s412_s19 = int_to_ptr.hbm [resolvable:$true] %s411_s19 }
  0x22   :  { %v522_v59 = vld [vmem:[#allocation5 + $0x1c] sm:$0xf]  ;;  %v303_v60 = vld [vmem:[#allocation8 + $0x60] sm:$0xff]  ;;  %v445_v62 = vld [vmem:[#allocation5 + $0x20] sm:$0xf]  ;;  %v438_v1 = vor.u32 %v523_v58, %v437_v55 }
  0x23   :  { %252 = vmatpush.bf16.msra.mxu0 %v474_v33  ;;  %344 = vmatpush.msra.mxu3 %v305_v49  ;;  %v439_v61 = vld [vmem:[#allocation5 + $0x24] sm:$0xf0]  ;;  %v524_v63 = vld [vmem:[#allocation5 + $0x28] sm:$0xf0]  ;;  %v302_v0 = vld [vmem:[#allocation8 + $0x58] sm:$0xff] }
  0x24   :  { %265 = vmatpush.bf16.msra.mxu1 %v478_v34  ;;  %v425_v2 = vld [vmem:[#allocation5] sm:$0xf]  ;;  %v442_v3 = vor.u32 %v522_v59, %v439_v61  ;;  %v446_v4 = vor.u32 %v524_v63, %v445_v62  ;;  %v520_v5 = vld [vmem:[#allocation5 + $0x8] sm:$0xf0]  ;;  %v519_v6 = vld [vmem:[#allocation5 + $0x4] sm:$0xf] }
  0x25   :  { %278 = vmatpush.bf16.msra.mxu2 %v482_v35  ;;  %345 = vmatpush.msra.mxu3 %v304_v53  ;;  %v301_v7 = vld [vmem:[#allocation8 + $0x50] sm:$0xff]  ;;  %v427_v8 = vld [vmem:[#allocation5 + $0xc] sm:$0xf0]  ;;  %v433_v9 = vld [vmem:[#allocation5 + $0x8] sm:$0xf]  ;;  %v426_v12 = vor.u32 %v520_v5, %v425_v2 }
  0x26   :  { %v521_v10 = vld [vmem:[#allocation5 + $0x10] sm:$0xf0]  ;;  %v300_v11 = vld [vmem:[#allocation8 + $0x48] sm:$0xff]  ;;  %v430_v13 = vor.u32 %v519_v6, %v427_v8  ;;  %v299_v15 = vld [vmem:[#allocation8 + $0x40] sm:$0xff] }
  0x27   :  { %253 = vmatpush.bf16.msra.mxu0 %v462_v42  ;;  %346 = vmatpush.msra.mxu3 %v303_v60  ;;  %v434_v14 = vor.u32 %v521_v10, %v433_v9  ;;  %v322_v16 = vld [vmem:[#allocation8 + $0xf8] sm:$0xff]  ;;  %v321_v20 = vld [vmem:[#allocation8 + $0xf0] sm:$0xff]  ;;  %v320_v23 = vld [vmem:[#allocation8 + $0xe8] sm:$0xff] }
  0x28   :  { %266 = vmatpush.bf16.msra.mxu1 %v466_v45  ;;  %v338_v17 = vld [vmem:[#allocation8 + $0x178] sm:$0xff]  ;;  %v337_v21 = vld [vmem:[#allocation8 + $0x170] sm:$0xff]  ;;  %v336_v24 = vld [vmem:[#allocation8 + $0x168] sm:$0xff] }
  0x29   :  { %279 = vmatpush.bf16.msra.mxu2 %v470_v46  ;;  %347 = vmatpush.msra.mxu3 %v302_v0  ;;  %v80_v18 = vld [vmem:[#allocation2] sm:$0xf]  ;;  %v297_v22 = vld [vmem:[#allocation8 + $0x30] sm:$0xff]  ;;  %v296_v25 = vld [vmem:[#allocation8 + $0x28] sm:$0xff] }
  0x2a   :  { %v298_v19 = vld [vmem:[#allocation8 + $0x38] sm:$0xff]  ;;  %v319_v26 = vld [vmem:[#allocation8 + $0xe0] sm:$0xff]  ;;  %v317_v32 = vld [vmem:[#allocation8 + $0xd0] sm:$0xff] }
  0x2b   :  { %254 = vmatpush.bf16.msra.mxu0 %v450_v54  ;;  %348 = vmatpush.msra.mxu3 %v301_v7  ;;  %v335_v27 = vld [vmem:[#allocation8 + $0x160] sm:$0xff]  ;;  %v318_v29 = vld [vmem:[#allocation8 + $0xd8] sm:$0xff]  ;;  %v333_v33 = vld [vmem:[#allocation8 + $0x150] sm:$0xff] }
  0x2c   :  { %267 = vmatpush.bf16.msra.mxu1 %v454_v56  ;;  %v295_v28 = vld [vmem:[#allocation8 + $0x20] sm:$0xff]  ;;  %v334_v30 = vld [vmem:[#allocation8 + $0x158] sm:$0xff]  ;;  %v316_v34 = vld [vmem:[#allocation8 + $0xc8] sm:$0xff] }
  0x2d   :  { %280 = vmatpush.bf16.msra.mxu2 %v458_v57  ;;  %349 = vmatpush.msra.mxu3 %v300_v11  ;;  %v294_v31 = vld [vmem:[#allocation8 + $0x18] sm:$0xff]  ;;  %v332_v35 = vld [vmem:[#allocation8 + $0x148] sm:$0xff]  ;;  %v315_v36 = vld [vmem:[#allocation8 + $0xc0] sm:$0xff] }
  0x2e   :  { %v331_v37 = vld [vmem:[#allocation8 + $0x140] sm:$0xff]  ;;  %v314_v38 = vld [vmem:[#allocation8 + $0xb8] sm:$0xff]  ;;  %v293_v39 = vld [vmem:[#allocation8 + $0x10] sm:$0xff] }
  0x2f   :  { %255 = vmatpush.bf16.msra.mxu0 %v438_v1  ;;  %350 = vmatpush.msra.mxu3 %v299_v15  ;;  %v313_v40 = vld [vmem:[#allocation8 + $0xb0] sm:$0xff]  ;;  %v330_v41 = vld [vmem:[#allocation8 + $0x138] sm:$0xff]  ;;  %v292_v42 = vld [vmem:[#allocation8 + $0x8] sm:$0xff] }
  0x30   :  { %268 = vmatpush.bf16.msra.mxu1 %v442_v3  ;;  %v312_v43 = vld [vmem:[#allocation8 + $0xa8] sm:$0xff]  ;;  %v329_v44 = vld [vmem:[#allocation8 + $0x130] sm:$0xff]  ;;  %v291_v45 = vld [vmem:[#allocation8] sm:$0xff] }
  0x31   :  { %281 = vmatpush.bf16.msra.mxu2 %v446_v4  ;;  %351 = vmatpush.msra.mxu3 %v298_v19  ;;  %v311_v46 = vld [vmem:[#allocation8 + $0xa0] sm:$0xff]  ;;  %v328_v47 = vld [vmem:[#allocation8 + $0x128] sm:$0xff]  ;;  %v310_v48 = vld [vmem:[#allocation8 + $0x98] sm:$0xff] }
  0x32   :  { %v327_v49 = vld [vmem:[#allocation8 + $0x120] sm:$0xff]  ;;  %v309_v50 = vld [vmem:[#allocation8 + $0x90] sm:$0xff]  ;;  %v326_v51 = vld [vmem:[#allocation8 + $0x118] sm:$0xff] }
  0x33   :  { %256 = vmatpush.bf16.msra.mxu0 %v426_v12  ;;  %352 = vmatpush.msra.mxu3 %v297_v22  ;;  %v308_v52 = vld [vmem:[#allocation8 + $0x88] sm:$0xff]  ;;  %v325_v53 = vld [vmem:[#allocation8 + $0x110] sm:$0xff]  ;;  %v307_v54 = vld [vmem:[#allocation8 + $0x80] sm:$0xff] }
  0x34   :  { %269 = vmatpush.bf16.msra.mxu1 %v430_v13  ;;  %v324_v55 = vld [vmem:[#allocation8 + $0x108] sm:$0xff]  ;;  %v323_v56 = vld [vmem:[#allocation8 + $0x100] sm:$0xff]  ;;  %v113_v57 = vld [vmem:[#allocation7] sm:$0x7] }
  0x35   :  { %282 = vmatpush.bf16.msra.mxu2 %v434_v14  ;;  %353 = vmatpush.msra.mxu3 %v296_v25  ;;  %v115_v58 = vperm.slane %v113_v57, 0  ;;  %v116_v59 = vperm.slane %v113_v57, 1  ;;  %v117_v2 = vperm.slane %v113_v57, 2  ;;  %v552_v9 = vld [vmem:[%s742_s4] ss:$0 sm:$0xff] }
  0x36   :  { %257 = vmatmul.bf16.vlgmr.msra.gmra.mxu0 %v80_v18 }
  0x37   :  { %363 = vmatpush.msrb.mxu0 %v322_v16  ;;  %270 = vmatmul.bf16.vlgmr.msra.gmra.mxu1 %v80_v18 }
  0x38   :  { %383 = vmatpush.msrb.mxu1 %v338_v17  ;;  %283 = vmatmul.bf16.vlgmr.msra.gmra.mxu2 %v80_v18 }
  0x39   :  { %364 = vmatpush.msrb.mxu0 %v321_v20  ;;  %354 = vmatpush.msra.mxu3 %v295_v28 }
  0x3a   :  { %384 = vmatpush.msrb.mxu1 %v337_v21 }
  0x3b   :  { %365 = vmatpush.msrb.mxu0 %v320_v23  ;;  %355 = vmatpush.msra.mxu3 %v294_v31 }
  0x3c   :  { %385 = vmatpush.msrb.mxu1 %v336_v24 }
  0x3d   :  { %366 = vmatpush.msrb.mxu0 %v319_v26  ;;  %356 = vmatpush.msra.mxu3 %v293_v39 }
  0x3e   :  { %386 = vmatpush.msrb.mxu1 %v335_v27 }
  0x3f   :  { %367 = vmatpush.msrb.mxu0 %v318_v29  ;;  %357 = vmatpush.msra.mxu3 %v292_v42 }
  0x40   :  { %387 = vmatpush.msrb.mxu1 %v334_v30 }
  0x41   :  { %368 = vmatpush.msrb.mxu0 %v317_v32  ;;  %358 = vmatpush.msra.mxu3 %v291_v45 }
  0x42   :  { %388 = vmatpush.msrb.mxu1 %v333_v33 }
  0x43   :  { %369 = vmatpush.msrb.mxu0 %v316_v34 }
  0x44   :  { %389 = vmatpush.msrb.mxu1 %v332_v35 }
  0x45   :  { %370 = vmatpush.msrb.mxu0 %v315_v36 }
  0x46   :  { %390 = vmatpush.msrb.mxu1 %v331_v37 }
  0x47   :  { %371 = vmatpush.msrb.mxu0 %v314_v38 }
  0x48   :  { %391 = vmatpush.msrb.mxu1 %v330_v41 }
  0x49   :  { %372 = vmatpush.msrb.mxu0 %v313_v40 }
  0x4a   :  { %392 = vmatpush.msrb.mxu1 %v329_v44 }
  0x4b   :  { %373 = vmatpush.msrb.mxu0 %v312_v43 }
  0x4c   :  { %393 = vmatpush.msrb.mxu1 %v328_v47 }
  0x4d   :  { %374 = vmatpush.msrb.mxu0 %v311_v46 }
  0x4e   :  { %394 = vmatpush.msrb.mxu1 %v327_v49 }
  0x4f   :  { %375 = vmatpush.msrb.mxu0 %v310_v48 }
  0x50   :  { %395 = vmatpush.msrb.mxu1 %v326_v51 }
  0x51   :  { %376 = vmatpush.msrb.mxu0 %v309_v50 }
  0x52   :  { %396 = vmatpush.msrb.mxu1 %v325_v53 }
  0x53   :  { %377 = vmatpush.msrb.mxu0 %v308_v52 }
  0x54   :  { %397 = vmatpush.msrb.mxu1 %v324_v55 }
  0x55   :  { %378 = vmatpush.msrb.mxu0 %v307_v54 }
  0x56   :  { %398 = vmatpush.msrb.mxu1 %v323_v56 }
  0xb3   :  { %v258_v60 = vpop.f32.mrf.mxu0 }
  0xb4   :  { %v259_v61 = vadd.f32 %v258_v60, %v115_v58  ;;  %v271_v62 = vpop.f32.mrf.mxu1 }
  0xb5   :  { %v272_v63 = vadd.f32 %v271_v62, %v116_v59 }
  0xb6   :  { %v288_v0 = vmax.f32 %v259_v61, 0.0 }
  0xb7   :  { %v289_v1 = vmax.f32 %v272_v63, 0.0 }
  0xb8   :  { %359 = vmatmul.f32.vlgmr.msra.gmra.mxu3 %v288_v0 }
  0xb9   :  { %379 = vmatmul.f32.vlgmr.msrb.gmra.mxu0 %v289_v1 }
  0xbb   :  { %v284_v3 = vpop.f32.mrf.mxu2  ;;  %v260_v5 = vpop.f32.mrf.mxu0 }
  0xbc   :  { %v285_v4 = vadd.f32 %v284_v3, %v117_v2  ;;  %v273_v6 = vpop.f32.mrf.mxu1 }
  0xbe   :  { %v290_v7 = vmax.f32 %v285_v4, 0.0 }
  0xc0   :  { %399 = vmatmul.f32.vlgmr.msrb.gmra.mxu1 %v290_v7 }
  0xc3   :  { %v286_v8 = vpop.f32.mrf.mxu2 }
 0x136   :  { %v380_v11 = vpop.f32.mrf.mxu0 }
 0x13b   :  { %v360_v10 = vpop.f32.mrf.mxu3 }
 0x13c   :  { %v361_v12 = vadd.f32 %v552_v9, %v360_v10 }
 0x13d   :  { %v400_v13 = vpop.f32.mrf.mxu1 }
 0x13e   :  { %v381_v14 = vadd.f32 %v380_v11, %v361_v12 }
 0x140   :  { %v401_v15 = vadd.f32 %v400_v13, %v381_v14 }
 0x142   :  { %403 = vst [vmem:[#allocation10] sm:$0xff] %v401_v15 }
 0x143   :  { %414 = dma.vmem_to_hbm [thread:$0]  %s410_s16, 128, %s412_s19, [#allocation4]  }
 0x144   :  { %679 = dma.done.wait [#allocation4], 128  }
 0x145   :  { %680 = vsyncadd [#allocation4], 4294967168 }
 0x146   :  { %419 = vsyncpa [#allocation3], 1 }
 0x147   :  { %420 = vsyncpa [#allocation6], 1 }
 0x148   :  { %421 = vsyncpa [#allocation9], 1 }
 0x149   :  { %422 = vsyncpa [#allocation4], 1 }

</bundles_post_ra>
